<compile_context>
chip_gen: v7x
topology: tpu7x:2x2x1
jax: 0.10.0
libtpu: 0.0.40
codegen_flags: <defaults>
</compile_context>

<pallas_src>
import functools

import jax
import jax.numpy as jnp
from jax.experimental import pallas as pl
from jax.experimental.pallas import tpu as pltpu

_BG = 8  # batch rows per grid block (one sublane group)


def _round_up(x, m):
    return (x + m - 1) // m * m


def _gru_kernel(x_ref, wih_ref, whh_ref, bhn_ref, wfc_ref, bfc_ref,
                y_ref, gi_ref, hc_ref, h_ref, *, hidden_pad, chunk, unroll):
    """One grid step = `chunk` timesteps of one 8-row batch group.

    x_ref   : (chunk, 8, D_in_pad)   time-major inputs; column D_in is a constant 1
                                     so folded (r,z,i_n) biases ride the input GEMM
    wih_ref : (D_in_pad, 3*H_pad)    input->gates weights (+ folded-bias row), gate panels
    whh_ref : (H_pad, 3*H_pad)       hidden->gates weights, gate panels
    bhn_ref : (8, H_pad)             b_hn replicated over sublanes (stays inside r*(...))
    wfc_ref : (H_pad, D_out_pad)     FC head weights
    bfc_ref : (1, D_out_pad)         FC head bias
    y_ref   : (chunk, 8, D_out_pad)  fused output block (lane-dense stores)
    gi_ref  : VMEM (chunk, 8, 3*H_pad) scratch: input gates for the chunk
    hc_ref  : VMEM (chunk, 8, H_pad)   scratch: per-step hidden states for the chunk
    h_ref   : VMEM (8, H_pad)          scratch: hidden state carried across grid steps
    """
    H = hidden_pad
    rows = chunk * _BG
    d_in_pad = x_ref.shape[2]
    d_out_pad = wfc_ref.shape[1]

    @pl.when(pl.program_id(1) == 0)   # new batch group -> h0 = 0
    def _():
        h_ref[...] = jnp.zeros_like(h_ref)

    # ---- Phase 1 (fused, off the serial path): input->gates GEMM for the whole chunk.
    x2 = x_ref[...].reshape(rows, d_in_pad)
    gi2 = jnp.dot(x2, wih_ref[...], preferred_element_type=jnp.float32)
    gi_ref[...] = gi2.reshape(chunk, _BG, 3 * H)

    bhn = bhn_ref[...]                # one vreg; no broadcast on the serial path

    # ---- Phase 2: serial GRU recurrence.
    # TODO(synk): latch W_hh in the MXU across the chunk via pltpu.matmul_push_rhs /
    # matmul_acc_lhs / matmul_pop (M=8 re-loads the 128x384 weight every step
    # otherwise); kept on jnp.dot for lowering robustness.
    def step(i, h):
        gi = gi_ref[i]                                                   # (8, 3H_pad)
        gh = jnp.dot(h, whh_ref[...], preferred_element_type=jnp.float32)
        # Gate panels are 128-lane aligned -> these slices are free.
        r = jax.nn.sigmoid(gi[:, 0:H] + gh[:, 0:H])
        z = jax.nn.sigmoid(gi[:, H:2 * H] + gh[:, H:2 * H])
        n = jnp.tanh(gi[:, 2 * H:3 * H] + r * (gh[:, 2 * H:3 * H] + bhn))
        h_new = n + z * (h - n)       # == (1-z)*n + z*h, one fewer op on the chain
        hc_ref[i] = h_new
        return h_new

    h_final = jax.lax.fori_loop(0, chunk, step, h_ref[...], unroll=unroll)
    h_ref[...] = h_final

    # ---- Phase 3 (fused, off the serial path): FC head over the whole chunk.
    h2 = hc_ref[...].reshape(rows, H)
    y2 = jnp.dot(h2, wfc_ref[...], preferred_element_type=jnp.float32) + bfc_ref[...]
    y_ref[...] = y2.reshape(chunk, _BG, d_out_pad)


def prepare_params(raw):
    """Transpose / pad / bias-fold PyTorch-layout GRU+Linear params for the kernel.

    raw: wih (3H, D_in), whh (3H, H), bih (3H,), bhh (3H,), wfc (D_out, H), bfc (D_out,)
    Gate order [r | z | n] as in PyTorch. Padded rows/columns are zero so padded
    lanes/rows of the recurrence stay inert.
    """
    wih, whh = raw["wih"], raw["whh"]
    bih, bhh = raw["bih"], raw["bhh"]
    wfc, bfc = raw["wfc"], raw["bfc"]
    H = whh.shape[1]
    D_in = wih.shape[1]
    D_out = wfc.shape[0]
    H_pad = _round_up(H, 128)
    D_in_pad = _round_up(D_in + 1, 8)      # +1 row for the folded bias (ones column in x)
    D_out_pad = _round_up(D_out, 128)

    def pad_gate_cols(w):                  # (X, 3H) -> (X, 3*H_pad), 128-lane gate panels
        panels = [jnp.pad(w[:, g * H:(g + 1) * H], ((0, 0), (0, H_pad - H)))
                  for g in range(3)]
        return jnp.concatenate(panels, axis=1)

    # Fold b_ih fully and the r/z parts of b_hh into the input-gates GEMM; b_hn must
    # stay separate: n = tanh(i_n + r * (W_hn h + b_hn)).
    bias_folded = jnp.concatenate([bih[0:H] + bhh[0:H],
                                   bih[H:2 * H] + bhh[H:2 * H],
                                   bih[2 * H:3 * H]])
    wih_aug = jnp.concatenate([wih.T, bias_folded.reshape(1, 3 * H)], axis=0)  # (D_in+1, 3H)
    wih_t_pad = jnp.pad(pad_gate_cols(wih_aug), ((0, D_in_pad - D_in - 1), (0, 0)))
    whh_t_pad = jnp.pad(pad_gate_cols(whh.T), ((0, H_pad - H), (0, 0)))
    bhn_pad = jnp.tile(jnp.pad(bhh[2 * H:3 * H].reshape(1, H),
                               ((0, 0), (0, H_pad - H))), (_BG, 1))
    wfc_t_pad = jnp.pad(wfc.T, ((0, H_pad - H), (0, D_out_pad - D_out)))
    bfc_pad = jnp.pad(bfc.reshape(1, D_out), ((0, 0), (0, D_out_pad - D_out)))

    return {
        "wih_t_pad": wih_t_pad, "whh_t_pad": whh_t_pad, "bhn_pad": bhn_pad,
        "wfc_t_pad": wfc_t_pad, "bfc_pad": bfc_pad,
        "input_dim": D_in, "input_pad": D_in_pad,
        "hidden_pad": H_pad, "output_dim": D_out, "output_pad": D_out_pad,
    }


def k_emo_gru_forward(x, prep, *, chunk=256, unroll=8):
    """x: (batch, seq, input_dim) float32 -> (batch, seq, output_dim) float32."""
    B, S, D_in = x.shape
    assert D_in == prep["input_dim"]
    H_pad = prep["hidden_pad"]
    D_in_pad = prep["input_pad"]
    D_out = prep["output_dim"]
    D_out_pad = prep["output_pad"]

    B_pad = _round_up(max(B, _BG), _BG)
    chunk = max(1, min(chunk, S))
    unroll = max(1, min(unroll, chunk))
    S_pad = _round_up(S, chunk)
    num_bg = B_pad // _BG
    num_t = S_pad // chunk

    # Time-major, zero-padded x with a constant-1 column at index D_in so the folded
    # biases are applied inside the fused input GEMM (no extra pass, no gi in HBM).
    x_tm = jnp.transpose(x.astype(jnp.float32), (1, 0, 2))            # (S, B, D_in)
    x_pad = jnp.zeros((S_pad, B_pad, D_in_pad), jnp.float32)
    x_pad = x_pad.at[:S, :B, :D_in].set(x_tm)
    x_pad = x_pad.at[:, :, D_in].set(1.0)

    kernel = functools.partial(_gru_kernel, hidden_pad=H_pad, chunk=chunk, unroll=unroll)

    y_pad = pl.pallas_call(
        kernel,
        out_shape=jax.ShapeDtypeStruct((S_pad, B_pad, D_out_pad), jnp.float32),
        grid_spec=pltpu.PrefetchScalarGridSpec(
            num_scalar_prefetch=0,
            grid=(num_bg, num_t),
            in_specs=[
                pl.BlockSpec((chunk, _BG, D_in_pad), lambda b, t: (t, b, 0)),
                pl.BlockSpec((D_in_pad, 3 * H_pad), lambda b, t: (0, 0)),
                pl.BlockSpec((H_pad, 3 * H_pad), lambda b, t: (0, 0)),
                pl.BlockSpec((_BG, H_pad), lambda b, t: (0, 0)),
                pl.BlockSpec((H_pad, D_out_pad), lambda b, t: (0, 0)),
                pl.BlockSpec((1, D_out_pad), lambda b, t: (0, 0)),
            ],
            out_specs=pl.BlockSpec((chunk, _BG, D_out_pad), lambda b, t: (t, b, 0)),
            scratch_shapes=[
                pltpu.VMEM((chunk, _BG, 3 * H_pad), jnp.float32),   # gi for the chunk
                pltpu.VMEM((chunk, _BG, H_pad), jnp.float32),       # h for the chunk
                pltpu.VMEM((_BG, H_pad), jnp.float32),              # carried hidden state
            ],
        ),
        compiler_params=pltpu.CompilerParams(
            # batch groups are independent (v7x: second TensorCore); time chunks are
            # strictly sequential (h carried in scratch).
            dimension_semantics=("parallel", "arbitrary"),
            vmem_limit_bytes=48 * 1024 * 1024,
        ),
    )(x_pad, prep["wih_t_pad"], prep["whh_t_pad"], prep["bhn_pad"],
      prep["wfc_t_pad"], prep["bfc_pad"])

    # Padded timesteps / batch rows / lanes are inert; slice them off.
    return jnp.transpose(y_pad[:S, :B, :D_out], (1, 0, 2))


def init_params(key, input_dim, hidden_dim, output_dim):
    """Deterministic init matching nn.GRU / nn.Linear parameter shapes (PyTorch layout)."""
    k = jax.random.split(key, 6)
    bound = 1.0 / jnp.sqrt(hidden_dim)
    wih = jax.random.uniform(k[0], (3 * hidden_dim, input_dim), jnp.float32, -bound, bound)
    whh = jax.random.uniform(k[1], (3 * hidden_dim, hidden_dim), jnp.float32, -bound, bound)
    bih = jax.random.uniform(k[2], (3 * hidden_dim,), jnp.float32, -bound, bound)
    bhh = jax.random.uniform(k[3], (3 * hidden_dim,), jnp.float32, -bound, bound)
    wfc = jax.random.uniform(k[4], (output_dim, hidden_dim), jnp.float32, -bound, bound)
    bfc = jax.random.uniform(k[5], (output_dim,), jnp.float32, -bound, bound)
    return {"wih": wih, "whh": whh, "bih": bih, "bhh": bhh, "wfc": wfc, "bfc": bfc}


def _reference_forward(x, raw, hidden_dim):
    """Pure-JAX reference of the same GRU + fc semantics (sanity check)."""
    H = hidden_dim
    wih_t, whh_t = raw["wih"].T, raw["whh"].T
    bih, bhh = raw["bih"], raw["bhh"]

    def step(h, x_t):
        gi = x_t @ wih_t + bih
        gh = h @ whh_t + bhh
        r = jax.nn.sigmoid(gi[:, :H] + gh[:, :H])
        z = jax.nn.sigmoid(gi[:, H:2 * H] + gh[:, H:2 * H])
        n = jnp.tanh(gi[:, 2 * H:] + r * gh[:, 2 * H:])
        h_new = (1.0 - z) * n + z * h
        return h_new, h_new

    B, S, _ = x.shape
    h0 = jnp.zeros((B, H), jnp.float32)
    _, hs = jax.lax.scan(step, h0, jnp.transpose(x, (1, 0, 2)))   # (S, B, H)
    out = hs @ raw["wfc"].T + raw["bfc"]
    return jnp.transpose(out, (1, 0, 2))


if __name__ == "__main__":
    # Small shapes consistent with the module: x is (batch, seq, input_dim).
    batch, seq, input_dim, hidden_dim, output_dim = 2, 8, 4, 32, 8

    key = jax.random.PRNGKey(0)
    kx, kp = jax.random.split(key)
    x = jax.random.normal(kx, (batch, seq, input_dim), jnp.float32)
    raw = init_params(kp, input_dim, hidden_dim, output_dim)
    prep = prepare_params(raw)
    ref = jax.block_until_ready(_reference_forward(x, raw, hidden_dim))

    # chunk=4 -> grid=(1, 2): exercises the hidden-state carry across grid steps.
    out = jax.block_until_ready(k_emo_gru_forward(x, prep, chunk=4, unroll=4))
    assert out.shape == (batch, seq, output_dim)
    assert jnp.allclose(out, ref, atol=1e-4, rtol=1e-4), "mismatch vs reference (chunked)"

    # Default (large-chunk) path: whole sequence in one grid step.
    out2 = jax.block_until_ready(k_emo_gru_forward(x, prep))
    assert jnp.allclose(out2, ref, atol=1e-4, rtol=1e-4), "mismatch vs reference (default)"

    # Multiple batch groups (parallel grid axis) + padded timesteps (seq % chunk != 0).
    x3 = jax.random.normal(jax.random.PRNGKey(1), (9, 5, input_dim), jnp.float32)
    out3 = jax.block_until_ready(k_emo_gru_forward(x3, prep, chunk=4, unroll=2))
    ref3 = jax.block_until_ready(_reference_forward(x3, raw, hidden_dim))
    assert jnp.allclose(out3, ref3, atol=1e-4, rtol=1e-4), "mismatch vs reference (batched)"

    print("KERNEL_OK")
</pallas_src>

<mosaic_0001>
module attributes {stable_mosaic.version = 11 : i64} {
  func.func @_gru_kernel(%arg0: i32, %arg1: i32, %arg2: memref<4x8x8xf32, #tpu.memory_space<vmem>>, %arg3: memref<8x384xf32, #tpu.memory_space<vmem>>, %arg4: memref<128x384xf32, #tpu.memory_space<vmem>>, %arg5: memref<8x128xf32, #tpu.memory_space<vmem>>, %arg6: memref<128x128xf32, #tpu.memory_space<vmem>>, %arg7: memref<1x128xf32, #tpu.memory_space<vmem>>, %arg8: memref<4x8x128xf32, #tpu.memory_space<vmem>>, %arg9: memref<4x8x384xf32, #tpu.memory_space<vmem>>, %arg10: memref<4x8x128xf32, #tpu.memory_space<vmem>>, %arg11: memref<8x128xf32, #tpu.memory_space<vmem>>) attributes {dimension_semantics = [#tpu.dimension_semantics<parallel>, #tpu.dimension_semantics<arbitrary>], iteration_bounds = array<i64: 1, 2>, scalar_prefetch = 0 : i64, scratch_operands = 3 : i64, tpu.core_type = #tpu.core_type<tc>, window_params = [{transform_indices = @transform_0, window_bounds = array<i64: 4, 8, 8>}, {pipeline_mode = #tpu.pipeline_mode<synchronous>, transform_indices = @transform_1, window_bounds = array<i64: 8, 384>}, {pipeline_mode = #tpu.pipeline_mode<synchronous>, transform_indices = @transform_2, window_bounds = array<i64: 128, 384>}, {pipeline_mode = #tpu.pipeline_mode<synchronous>, transform_indices = @transform_3, window_bounds = array<i64: 8, 128>}, {pipeline_mode = #tpu.pipeline_mode<synchronous>, transform_indices = @transform_4, window_bounds = array<i64: 128, 128>}, {pipeline_mode = #tpu.pipeline_mode<synchronous>, transform_indices = @transform_5, window_bounds = array<i64: 1, 128>}, {transform_indices = @transform_6, window_bounds = array<i64: 4, 8, 128>}]} {
    %c0_i32 = arith.constant 0 : i32
    %0 = arith.cmpi eq, %arg1, %c0_i32 : i32
    %1 = arith.extui %0 : i1 to i32
    %c0_i32_0 = arith.constant 0 : i32
    %2 = arith.cmpi ne, %1, %c0_i32_0 : i32
    scf.if %2 {
      %cst_62 = arith.constant 0.000000e+00 : f32
      %157 = vector.broadcast %cst_62 : f32 to vector<8x128xf32>
      %c0_63 = arith.constant 0 : index
      %c0_64 = arith.constant 0 : index
      %158 = vector.load %arg11[%c0_63, %c0_64] : memref<8x128xf32, #tpu.memory_space<vmem>>, vector<8x128xf32>
      tpu.vector_store %arg11[%c0_63, %c0_64], %157 {strides = array<i32>} : memref<8x128xf32, #tpu.memory_space<vmem>>, vector<8x128xf32>,
    } else {
    }
    %c0 = arith.constant 0 : index
    %c0_1 = arith.constant 0 : index
    %c0_2 = arith.constant 0 : index
    %3 = vector.load %arg2[%c0, %c0_1, %c0_2] : memref<4x8x8xf32, #tpu.memory_space<vmem>>, vector<4x8x8xf32>
    %4 = vector.shape_cast %3 : vector<4x8x8xf32> to vector<32x8xf32>
    %c0_3 = arith.constant 0 : index
    %c0_4 = arith.constant 0 : index
    %5 = vector.load %arg3[%c0_3, %c0_4] : memref<8x384xf32, #tpu.memory_space<vmem>>, vector<8x384xf32>
    %cst = arith.constant dense<0.000000e+00> : vector<32x384xf32>
    %6 = tpu.matmul %4, %5, %cst {dimension_numbers = #tpu.dot_dimension_numbers<[1], [0], [0], [1], [0, 0, 1, 1], [], []>} : vector<32x8xf32>, vector<8x384xf32>, vector<32x384xf32> -> vector<32x384xf32>
    %7 = vector.shape_cast %6 : vector<32x384xf32> to vector<4x8x384xf32>
    %c0_5 = arith.constant 0 : index
    %c0_6 = arith.constant 0 : index
    %c0_7 = arith.constant 0 : index
    %8 = vector.load %arg9[%c0_5, %c0_6, %c0_7] : memref<4x8x384xf32, #tpu.memory_space<vmem>>, vector<4x8x384xf32>
    tpu.vector_store %arg9[%c0_5, %c0_6, %c0_7], %7 {strides = array<i32>} : memref<4x8x384xf32, #tpu.memory_space<vmem>>, vector<4x8x384xf32>,
    %c0_8 = arith.constant 0 : index
    %c0_9 = arith.constant 0 : index
    %9 = vector.load %arg5[%c0_8, %c0_9] : memref<8x128xf32, #tpu.memory_space<vmem>>, vector<8x128xf32>
    %c0_10 = arith.constant 0 : index
    %c0_11 = arith.constant 0 : index
    %10 = vector.load %arg11[%c0_10, %c0_11] : memref<8x128xf32, #tpu.memory_space<vmem>>, vector<8x128xf32>
    %c0_i32_12 = arith.constant 0 : i32
    %11 = arith.index_cast %c0_i32_12 : i32 to index
    %c0_13 = arith.constant 0 : index
    %c0_14 = arith.constant 0 : index
    %12 = vector.load %arg9[%11, %c0_13, %c0_14] : memref<4x8x384xf32, #tpu.memory_space<vmem>>, vector<1x8x384xf32>
    %13 = vector.shape_cast %12 : vector<1x8x384xf32> to vector<8x384xf32>
    %c0_15 = arith.constant 0 : index
    %c0_16 = arith.constant 0 : index
    %14 = vector.load %arg4[%c0_15, %c0_16] : memref<128x384xf32, #tpu.memory_space<vmem>>, vector<128x384xf32>
    %cst_17 = arith.constant dense<0.000000e+00> : vector<8x384xf32>
    %15 = tpu.matmul %10, %14, %cst_17 {dimension_numbers = #tpu.dot_dimension_numbers<[1], [0], [0], [1], [0, 0, 1, 1], [], []>} : vector<8x128xf32>, vector<128x384xf32>, vector<8x384xf32> -> vector<8x384xf32>
    %16 = vector.extract_strided_slice %13 {offsets = [0, 0], sizes = [8, 128], strides = [1, 1]} : vector<8x384xf32> to vector<8x128xf32>
    %17 = vector.extract_strided_slice %15 {offsets = [0, 0], sizes = [8, 128], strides = [1, 1]} : vector<8x384xf32> to vector<8x128xf32>
    %18 = arith.addf %16, %17 : vector<8x128xf32>
    %19 = arith.negf %18 : vector<8x128xf32>
    %20 = math.exp %19 : vector<8x128xf32>
    %cst_18 = arith.constant 1.000000e+00 : f32
    %21 = vector.broadcast %cst_18 : f32 to vector<8x128xf32>
    %22 = arith.addf %21, %20 : vector<8x128xf32>
    %23 = arith.divf %21, %22 : vector<8x128xf32>
    %24 = vector.extract_strided_slice %13 {offsets = [0, 128], sizes = [8, 128], strides = [1, 1]} : vector<8x384xf32> to vector<8x128xf32>
    %25 = vector.extract_strided_slice %15 {offsets = [0, 128], sizes = [8, 128], strides = [1, 1]} : vector<8x384xf32> to vector<8x128xf32>
    %26 = arith.addf %24, %25 : vector<8x128xf32>
    %27 = arith.negf %26 : vector<8x128xf32>
    %28 = math.exp %27 : vector<8x128xf32>
    %cst_19 = arith.constant 1.000000e+00 : f32
    %29 = vector.broadcast %cst_19 : f32 to vector<8x128xf32>
    %30 = arith.addf %29, %28 : vector<8x128xf32>
    %31 = arith.divf %29, %30 : vector<8x128xf32>
    %32 = vector.extract_strided_slice %13 {offsets = [0, 256], sizes = [8, 128], strides = [1, 1]} : vector<8x384xf32> to vector<8x128xf32>
    %33 = vector.extract_strided_slice %15 {offsets = [0, 256], sizes = [8, 128], strides = [1, 1]} : vector<8x384xf32> to vector<8x128xf32>
    %34 = arith.addf %33, %9 : vector<8x128xf32>
    %35 = arith.mulf %23, %34 : vector<8x128xf32>
    %36 = arith.addf %32, %35 : vector<8x128xf32>
    %37 = math.tanh %36 : vector<8x128xf32>
    %38 = arith.subf %10, %37 : vector<8x128xf32>
    %39 = arith.mulf %31, %38 : vector<8x128xf32>
    %40 = arith.addf %37, %39 : vector<8x128xf32>
    %41 = arith.index_cast %c0_i32_12 : i32 to index
    %c0_20 = arith.constant 0 : index
    %c0_21 = arith.constant 0 : index
    %42 = vector.load %arg10[%41, %c0_20, %c0_21] : memref<4x8x128xf32, #tpu.memory_space<vmem>>, vector<1x8x128xf32>
    %43 = vector.shape_cast %42 : vector<1x8x128xf32> to vector<8x128xf32>
    %44 = vector.shape_cast %40 : vector<8x128xf32> to vector<1x8x128xf32>
    tpu.vector_store %arg10[%41, %c0_20, %c0_21], %44 {strides = array<i32>} : memref<4x8x128xf32, #tpu.memory_space<vmem>>, vector<1x8x128xf32>,
    %c1_i32 = arith.constant 1 : i32
    %45 = arith.index_cast %c1_i32 : i32 to index
    %c0_22 = arith.constant 0 : index
    %c0_23 = arith.constant 0 : index
    %46 = vector.load %arg9[%45, %c0_22, %c0_23] : memref<4x8x384xf32, #tpu.memory_space<vmem>>, vector<1x8x384xf32>
    %47 = vector.shape_cast %46 : vector<1x8x384xf32> to vector<8x384xf32>
    %c0_24 = arith.constant 0 : index
    %c0_25 = arith.constant 0 : index
    %48 = vector.load %arg4[%c0_24, %c0_25] : memref<128x384xf32, #tpu.memory_space<vmem>>, vector<128x384xf32>
    %cst_26 = arith.constant dense<0.000000e+00> : vector<8x384xf32>
    %49 = tpu.matmul %40, %48, %cst_26 {dimension_numbers = #tpu.dot_dimension_numbers<[1], [0], [0], [1], [0, 0, 1, 1], [], []>} : vector<8x128xf32>, vector<128x384xf32>, vector<8x384xf32> -> vector<8x384xf32>
    %50 = vector.extract_strided_slice %47 {offsets = [0, 0], sizes = [8, 128], strides = [1, 1]} : vector<8x384xf32> to vector<8x128xf32>
    %51 = vector.extract_strided_slice %49 {offsets = [0, 0], sizes = [8, 128], strides = [1, 1]} : vector<8x384xf32> to vector<8x128xf32>
    %52 = arith.addf %50, %51 : vector<8x128xf32>
    %53 = arith.negf %52 : vector<8x128xf32>
    %54 = math.exp %53 : vector<8x128xf32>
    %cst_27 = arith.constant 1.000000e+00 : f32
    %55 = vector.broadcast %cst_27 : f32 to vector<8x128xf32>
    %56 = arith.addf %55, %54 : vector<8x128xf32>
    %57 = arith.divf %55, %56 : vector<8x128xf32>
    %58 = vector.extract_strided_slice %47 {offsets = [0, 128], sizes = [8, 128], strides = [1, 1]} : vector<8x384xf32> to vector<8x128xf32>
    %59 = vector.extract_strided_slice %49 {offsets = [0, 128], sizes = [8, 128], strides = [1, 1]} : vector<8x384xf32> to vector<8x128xf32>
    %60 = arith.addf %58, %59 : vector<8x128xf32>
    %61 = arith.negf %60 : vector<8x128xf32>
    %62 = math.exp %61 : vector<8x128xf32>
    %cst_28 = arith.constant 1.000000e+00 : f32
    %63 = vector.broadcast %cst_28 : f32 to vector<8x128xf32>
    %64 = arith.addf %63, %62 : vector<8x128xf32>
    %65 = arith.divf %63, %64 : vector<8x128xf32>
    %66 = vector.extract_strided_slice %47 {offsets = [0, 256], sizes = [8, 128], strides = [1, 1]} : vector<8x384xf32> to vector<8x128xf32>
    %67 = vector.extract_strided_slice %49 {offsets = [0, 256], sizes = [8, 128], strides = [1, 1]} : vector<8x384xf32> to vector<8x128xf32>
    %68 = arith.addf %67, %9 : vector<8x128xf32>
    %69 = arith.mulf %57, %68 : vector<8x128xf32>
    %70 = arith.addf %66, %69 : vector<8x128xf32>
    %71 = math.tanh %70 : vector<8x128xf32>
    %72 = arith.subf %40, %71 : vector<8x128xf32>
    %73 = arith.mulf %65, %72 : vector<8x128xf32>
    %74 = arith.addf %71, %73 : vector<8x128xf32>
    %75 = arith.index_cast %c1_i32 : i32 to index
    %c0_29 = arith.constant 0 : index
    %c0_30 = arith.constant 0 : index
    %76 = vector.load %arg10[%75, %c0_29, %c0_30] : memref<4x8x128xf32, #tpu.memory_space<vmem>>, vector<1x8x128xf32>
    %77 = vector.shape_cast %76 : vector<1x8x128xf32> to vector<8x128xf32>
    %78 = vector.shape_cast %74 : vector<8x128xf32> to vector<1x8x128xf32>
    tpu.vector_store %arg10[%75, %c0_29, %c0_30], %78 {strides = array<i32>} : memref<4x8x128xf32, #tpu.memory_space<vmem>>, vector<1x8x128xf32>,
    %c2_i32 = arith.constant 2 : i32
    %79 = arith.index_cast %c2_i32 : i32 to index
    %c0_31 = arith.constant 0 : index
    %c0_32 = arith.constant 0 : index
    %80 = vector.load %arg9[%79, %c0_31, %c0_32] : memref<4x8x384xf32, #tpu.memory_space<vmem>>, vector<1x8x384xf32>
    %81 = vector.shape_cast %80 : vector<1x8x384xf32> to vector<8x384xf32>
    %c0_33 = arith.constant 0 : index
    %c0_34 = arith.constant 0 : index
    %82 = vector.load %arg4[%c0_33, %c0_34] : memref<128x384xf32, #tpu.memory_space<vmem>>, vector<128x384xf32>
    %cst_35 = arith.constant dense<0.000000e+00> : vector<8x384xf32>
    %83 = tpu.matmul %74, %82, %cst_35 {dimension_numbers = #tpu.dot_dimension_numbers<[1], [0], [0], [1], [0, 0, 1, 1], [], []>} : vector<8x128xf32>, vector<128x384xf32>, vector<8x384xf32> -> vector<8x384xf32>
    %84 = vector.extract_strided_slice %81 {offsets = [0, 0], sizes = [8, 128], strides = [1, 1]} : vector<8x384xf32> to vector<8x128xf32>
    %85 = vector.extract_strided_slice %83 {offsets = [0, 0], sizes = [8, 128], strides = [1, 1]} : vector<8x384xf32> to vector<8x128xf32>
    %86 = arith.addf %84, %85 : vector<8x128xf32>
    %87 = arith.negf %86 : vector<8x128xf32>
    %88 = math.exp %87 : vector<8x128xf32>
    %cst_36 = arith.constant 1.000000e+00 : f32
    %89 = vector.broadcast %cst_36 : f32 to vector<8x128xf32>
    %90 = arith.addf %89, %88 : vector<8x128xf32>
    %91 = arith.divf %89, %90 : vector<8x128xf32>
    %92 = vector.extract_strided_slice %81 {offsets = [0, 128], sizes = [8, 128], strides = [1, 1]} : vector<8x384xf32> to vector<8x128xf32>
    %93 = vector.extract_strided_slice %83 {offsets = [0, 128], sizes = [8, 128], strides = [1, 1]} : vector<8x384xf32> to vector<8x128xf32>
    %94 = arith.addf %92, %93 : vector<8x128xf32>
    %95 = arith.negf %94 : vector<8x128xf32>
    %96 = math.exp %95 : vector<8x128xf32>
    %cst_37 = arith.constant 1.000000e+00 : f32
    %97 = vector.broadcast %cst_37 : f32 to vector<8x128xf32>
    %98 = arith.addf %97, %96 : vector<8x128xf32>
    %99 = arith.divf %97, %98 : vector<8x128xf32>
    %100 = vector.extract_strided_slice %81 {offsets = [0, 256], sizes = [8, 128], strides = [1, 1]} : vector<8x384xf32> to vector<8x128xf32>
    %101 = vector.extract_strided_slice %83 {offsets = [0, 256], sizes = [8, 128], strides = [1, 1]} : vector<8x384xf32> to vector<8x128xf32>
    %102 = arith.addf %101, %9 : vector<8x128xf32>
    %103 = arith.mulf %91, %102 : vector<8x128xf32>
    %104 = arith.addf %100, %103 : vector<8x128xf32>
    %105 = math.tanh %104 : vector<8x128xf32>
    %106 = arith.subf %74, %105 : vector<8x128xf32>
    %107 = arith.mulf %99, %106 : vector<8x128xf32>
    %108 = arith.addf %105, %107 : vector<8x128xf32>
    %109 = arith.index_cast %c2_i32 : i32 to index
    %c0_38 = arith.constant 0 : index
    %c0_39 = arith.constant 0 : index
    %110 = vector.load %arg10[%109, %c0_38, %c0_39] : memref<4x8x128xf32, #tpu.memory_space<vmem>>, vector<1x8x128xf32>
    %111 = vector.shape_cast %110 : vector<1x8x128xf32> to vector<8x128xf32>
    %112 = vector.shape_cast %108 : vector<8x128xf32> to vector<1x8x128xf32>
    tpu.vector_store %arg10[%109, %c0_38, %c0_39], %112 {strides = array<i32>} : memref<4x8x128xf32, #tpu.memory_space<vmem>>, vector<1x8x128xf32>,
    %c3_i32 = arith.constant 3 : i32
    %113 = arith.index_cast %c3_i32 : i32 to index
    %c0_40 = arith.constant 0 : index
    %c0_41 = arith.constant 0 : index
    %114 = vector.load %arg9[%113, %c0_40, %c0_41] : memref<4x8x384xf32, #tpu.memory_space<vmem>>, vector<1x8x384xf32>
    %115 = vector.shape_cast %114 : vector<1x8x384xf32> to vector<8x384xf32>
    %c0_42 = arith.constant 0 : index
    %c0_43 = arith.constant 0 : index
    %116 = vector.load %arg4[%c0_42, %c0_43] : memref<128x384xf32, #tpu.memory_space<vmem>>, vector<128x384xf32>
    %cst_44 = arith.constant dense<0.000000e+00> : vector<8x384xf32>
    %117 = tpu.matmul %108, %116, %cst_44 {dimension_numbers = #tpu.dot_dimension_numbers<[1], [0], [0], [1], [0, 0, 1, 1], [], []>} : vector<8x128xf32>, vector<128x384xf32>, vector<8x384xf32> -> vector<8x384xf32>
    %118 = vector.extract_strided_slice %115 {offsets = [0, 0], sizes = [8, 128], strides = [1, 1]} : vector<8x384xf32> to vector<8x128xf32>
    %119 = vector.extract_strided_slice %117 {offsets = [0, 0], sizes = [8, 128], strides = [1, 1]} : vector<8x384xf32> to vector<8x128xf32>
    %120 = arith.addf %118, %119 : vector<8x128xf32>
    %121 = arith.negf %120 : vector<8x128xf32>
    %122 = math.exp %121 : vector<8x128xf32>
    %cst_45 = arith.constant 1.000000e+00 : f32
    %123 = vector.broadcast %cst_45 : f32 to vector<8x128xf32>
    %124 = arith.addf %123, %122 : vector<8x128xf32>
    %125 = arith.divf %123, %124 : vector<8x128xf32>
    %126 = vector.extract_strided_slice %115 {offsets = [0, 128], sizes = [8, 128], strides = [1, 1]} : vector<8x384xf32> to vector<8x128xf32>
    %127 = vector.extract_strided_slice %117 {offsets = [0, 128], sizes = [8, 128], strides = [1, 1]} : vector<8x384xf32> to vector<8x128xf32>
    %128 = arith.addf %126, %127 : vector<8x128xf32>
    %129 = arith.negf %128 : vector<8x128xf32>
    %130 = math.exp %129 : vector<8x128xf32>
    %cst_46 = arith.constant 1.000000e+00 : f32
    %131 = vector.broadcast %cst_46 : f32 to vector<8x128xf32>
    %132 = arith.addf %131, %130 : vector<8x128xf32>
    %133 = arith.divf %131, %132 : vector<8x128xf32>
    %134 = vector.extract_strided_slice %115 {offsets = [0, 256], sizes = [8, 128], strides = [1, 1]} : vector<8x384xf32> to vector<8x128xf32>
    %135 = vector.extract_strided_slice %117 {offsets = [0, 256], sizes = [8, 128], strides = [1, 1]} : vector<8x384xf32> to vector<8x128xf32>
    %136 = arith.addf %135, %9 : vector<8x128xf32>
    %137 = arith.mulf %125, %136 : vector<8x128xf32>
    %138 = arith.addf %134, %137 : vector<8x128xf32>
    %139 = math.tanh %138 : vector<8x128xf32>
    %140 = arith.subf %108, %139 : vector<8x128xf32>
    %141 = arith.mulf %133, %140 : vector<8x128xf32>
    %142 = arith.addf %139, %141 : vector<8x128xf32>
    %143 = arith.index_cast %c3_i32 : i32 to index
    %c0_47 = arith.constant 0 : index
    %c0_48 = arith.constant 0 : index
    %144 = vector.load %arg10[%143, %c0_47, %c0_48] : memref<4x8x128xf32, #tpu.memory_space<vmem>>, vector<1x8x128xf32>
    %145 = vector.shape_cast %144 : vector<1x8x128xf32> to vector<8x128xf32>
    %146 = vector.shape_cast %142 : vector<8x128xf32> to vector<1x8x128xf32>
    tpu.vector_store %arg10[%143, %c0_47, %c0_48], %146 {strides = array<i32>} : memref<4x8x128xf32, #tpu.memory_space<vmem>>, vector<1x8x128xf32>,
    %c4_i32 = arith.constant 4 : i32
    %c0_49 = arith.constant 0 : index
    %c0_50 = arith.constant 0 : index
    %147 = vector.load %arg11[%c0_49, %c0_50] : memref<8x128xf32, #tpu.memory_space<vmem>>, vector<8x128xf32>
    tpu.vector_store %arg11[%c0_49, %c0_50], %142 {strides = array<i32>} : memref<8x128xf32, #tpu.memory_space<vmem>>, vector<8x128xf32>,
    %c0_51 = arith.constant 0 : index
    %c0_52 = arith.constant 0 : index
    %c0_53 = arith.constant 0 : index
    %148 = vector.load %arg10[%c0_51, %c0_52, %c0_53] : memref<4x8x128xf32, #tpu.memory_space<vmem>>, vector<4x8x128xf32>
    %149 = vector.shape_cast %148 : vector<4x8x128xf32> to vector<32x128xf32>
    %c0_54 = arith.constant 0 : index
    %c0_55 = arith.constant 0 : index
    %150 = vector.load %arg6[%c0_54, %c0_55] : memref<128x128xf32, #tpu.memory_space<vmem>>, vector<128x128xf32>
    %cst_56 = arith.constant dense<0.000000e+00> : vector<32x128xf32>
    %151 = tpu.matmul %149, %150, %cst_56 {dimension_numbers = #tpu.dot_dimension_numbers<[1], [0], [0], [1], [0, 0, 1, 1], [], []>} : vector<32x128xf32>, vector<128x128xf32>, vector<32x128xf32> -> vector<32x128xf32>
    %c0_57 = arith.constant 0 : index
    %c0_58 = arith.constant 0 : index
    %152 = vector.load %arg7[%c0_57, %c0_58] : memref<1x128xf32, #tpu.memory_space<vmem>>, vector<1x128xf32>
    %153 = vector.broadcast %152 : vector<1x128xf32> to vector<32x128xf32>
    %154 = arith.addf %151, %153 : vector<32x128xf32>
    %155 = vector.shape_cast %154 : vector<32x128xf32> to vector<4x8x128xf32>
    %c0_59 = arith.constant 0 : index
    %c0_60 = arith.constant 0 : index
    %c0_61 = arith.constant 0 : index
    %156 = vector.load %arg8[%c0_59, %c0_60, %c0_61] : memref<4x8x128xf32, #tpu.memory_space<vmem>>, vector<4x8x128xf32>
    tpu.vector_store %arg8[%c0_59, %c0_60, %c0_61], %155 {strides = array<i32>} : memref<4x8x128xf32, #tpu.memory_space<vmem>>, vector<4x8x128xf32>,
    return
  }
  func.func @transform_0(%arg0: i32, %arg1: i32) -> (i32, i32, i32) {
    %c0_i32 = arith.constant 0 : i32
    %c0_i32_0 = arith.constant 0 : i32
    return %arg1, %arg0, %c0_i32 : i32, i32, i32
  }
  func.func @transform_1(%arg0: i32, %arg1: i32) -> (i32, i32) {
    %c0_i32 = arith.constant 0 : i32
    %c0_i32_0 = arith.constant 0 : i32
    %c0_i32_1 = arith.constant 0 : i32
    return %c0_i32, %c0_i32_0 : i32, i32
  }
  func.func @transform_2(%arg0: i32, %arg1: i32) -> (i32, i32) {
    %c0_i32 = arith.constant 0 : i32
    %c0_i32_0 = arith.constant 0 : i32
    %c0_i32_1 = arith.constant 0 : i32
    return %c0_i32, %c0_i32_0 : i32, i32
  }
  func.func @transform_3(%arg0: i32, %arg1: i32) -> (i32, i32) {
    %c0_i32 = arith.constant 0 : i32
    %c0_i32_0 = arith.constant 0 : i32
    %c0_i32_1 = arith.constant 0 : i32
    return %c0_i32, %c0_i32_0 : i32, i32
  }
  func.func @transform_4(%arg0: i32, %arg1: i32) -> (i32, i32) {
    %c0_i32 = arith.constant 0 : i32
    %c0_i32_0 = arith.constant 0 : i32
    %c0_i32_1 = arith.constant 0 : i32
    return %c0_i32, %c0_i32_0 : i32, i32
  }
  func.func @transform_5(%arg0: i32, %arg1: i32) -> (i32, i32) {
    %c0_i32 = arith.constant 0 : i32
    %c0_i32_0 = arith.constant 0 : i32
    %c0_i32_1 = arith.constant 0 : i32
    return %c0_i32, %c0_i32_0 : i32, i32
  }
  func.func @transform_6(%arg0: i32, %arg1: i32) -> (i32, i32, i32) {
    %c0_i32 = arith.constant 0 : i32
    %c0_i32_0 = arith.constant 0 : i32
    return %arg1, %arg0, %c0_i32 : i32, i32, i32
  }
}

</mosaic_0001>

<bundles_post_ra>
// kernel: tpu_custom_call.1
= control target key start
LH: loop header
LB: loop body
LE: loop exit
PB: predicated region body
PF: predicated region fallthrough
CT: control target
= control target key end

     0   :  { %s3172_s0 = inlined_call_operand.hbm [shape: f32[8,8,8], index: 0, kind: input, shape index: {}]   ;;  %s3173_s1 = inlined_call_operand.hbm [shape: f32[8,384], index: 1, kind: input, shape index: {}]   ;;  %s3174_s2 = inlined_call_operand.hbm [shape: f32[128,384], index: 2, kind: input, shape index: {}]   ;;  %s3175_s3 = inlined_call_operand.vmem [shape: f32[8,128], index: 3, kind: input, shape index: {}]   ;;  %s3176_s4 = inlined_call_operand.hbm [shape: f32[128,128], index: 4, kind: input, shape index: {}]   ;;  %s3177_s5 = inlined_call_operand.vmem [shape: f32[1,128], index: 5, kind: input, shape index: {}]   ;;  %s3178_s6 = inlined_call_operand.hbm [shape: f32[8,8,128], index: 6, kind: output, shape index: {}]  }
   0x1   :  { %3184 = sst [smem:[#allocation19_spill]] %s3173_s1 }
   0x2   :  { %11 = vsyncpa [#allocation6], 0 }
   0x3   :  { %13 = vsyncpa [#allocation6 + $0x1], 0 }
   0x4   :  { %14 = vsyncpa [#allocation9], 0 }
   0x5   :  { %15 = vsyncpa [#allocation12], 0 }
   0x6   :  { %16 = vsyncpa [#allocation7], 0 }
   0x7   :  { %18 = vsyncpa [#allocation7 + $0x1], 0  ;;  %s2635_s21 = smov 0   ;;  %s2637_s22 = smov 0  }
   0x8   :  { %s2639_s23 = smov 0   ;;  %s2641_s24 = smov 0  }
   0x9   :  { %s2643_s25 = smov 0   ;;  %s2645_s26 = smov 0  }
   0xa LB: > { %s1652_s27 = sadd.s32 4294967295, %s2583_s26   ;;  %s1653_s28 = sadd.s32 4294967294, %s2583_s26   ;;  %s2583_s26 = sphi %s2645_s26, %s24_s26   ;;  %s2579_s25 = sphi %s2643_s25, %s3207_s25   ;;  %s2575_s24 = sphi %s2641_s24, %s3206_s24   ;;  %s2571_s23 = sphi %s2639_s23, %s3205_s23   ;;  %s2567_s22 = sphi %s2637_s22, %s3204_s22   ;;  %s2563_s21 = sphi %s2635_s21, %s3203_s21  }
   0xb   : > { %p58_p0 = scmp.ne.s32.totalorder %s2567_s22, %s2563_s21  ;;  %p2669_p1 = scmp.eq.s32.totalorder %s1652_s27, 0 }
   0xc   : > { %p2673_p2 = scmp.eq.s32.totalorder %s1652_s27, 1  ;;  %p195_p3 = scmp.eq.s32.totalorder %s1653_s28, 1 }
   0xd   : > { %s3185_s29 = scalar_select %p2669_p1, 1, 0 }
   0xe   : > { %s3186_s30 = scalar_select %p2673_p2, 1, 0 }
   0xf   : > { %p2679_p4 = por %p2669_p1, %p58_p0  ;;  %p1654_p5 = scmp.ge.s32.totalorder %s2583_s26, 1 }
  0x10   : > { %p2684_p6 = por %p195_p3, %p58_p0  ;;  %p202_p7 = scmp.lt.s32.totalorder %s2583_s26, 3 }
  0x11   : > { %s3187_s7 = scalar_select %p2679_p4, 1, 0 }
  0x12   : > { %s3188_s8 = scalar_select %p2684_p6, 1, 0 }
  0x13   : > { %p2689_p8 = pnand %p1654_p5, %p202_p7  ;;  %s2585_s10 = smov [#allocation8]  }
  0x14   : > { %3189 = sst [smem:[#allocation18_spill]] %s3188_s8  ;;  %s215_s11 = sshll.u32 %s2585_s10, 4  ;;  %s216_s11 = int_to_ptr.vmem [resolvable:$true] %s215_s11 }
  0x15   : > { %s3190_s9 = scalar_select %p2689_p8, 1, 0 }
  0x16   : > { %p2252_p10 = pneg %p2689_p8  ;;  %s2586_s12 = smov [#allocation10]  }
  0x17   : > { %s225_s13 = sshll.u32 %s2586_s12, 4  ;;  %s2587_s15 = smov [#allocation11]   ;;  %s2702_s13 = int_to_ptr.vmem [resolvable:$true] %s225_s13 }
  0x18   : > { %p2698_p11 = pnand %p2252_p10, %p2669_p1  ;;  %s2704_s16 = sshll.u32 %s2587_s15, 4  ;;  %s242_s16 = int_to_ptr.vmem [resolvable:$true] %s2704_s16 }
  0x19   : > { %s3192_s1 = sld [smem:[#allocation19_spill]] }
  0x1a   : > { %p2714_p13 = pneg %p2698_p11 }
  0x1f   : > { %s2379_s19 = scalar_lea.hbm %s3192_s1, 384 }
  0x20   : > { %p2380_p12 = scmp.ne.s32.totalorder %s3192_s1, %s2379_s19  ;;  %p2386_p5 = scmp.lt.u32.totalorder %s2379_s19, %s3192_s1 }
  0x22   : > { %p2382_p0 = pnand %p2714_p13, %p2380_p12 }
  0x24   : > { %p2383_p3 = pneg %p2382_p0 }
  0x26   : > { %p2388_p7 = pnand %p2386_p5, %p2383_p3 }
  0x28   : > { %2391 = shalt.err (!%p2388_p7)
}
  0x29   : > { %s2392_s15 = scalar_lea.vmem %s216_s11, 384  ;;  %p2400_p1 = scmp.lt.s32.totalorder %s216_s11, %s216_s11 }
  0x2a   : > { %p2393_p10 = scmp.ne.s32.totalorder %s216_s11, %s2392_s15  ;;  %p2401_p4 = scmp.lt.s32.totalorder %s2392_s15, %s2392_s15 }
  0x2c   : > { %p2395_p9 = pnand %p2393_p10, %p2714_p13  ;;  %p2402_p8 = por %p2401_p4, %p2400_p1 }
  0x2e   : > { %p2396_p6 = pneg %p2395_p9 }
  0x30   : > { %p2403_p2 = pnand %p2402_p8, %p2396_p6 }
  0x32   : > { %2406 = shalt.err (!%p2403_p2)
}
  0x33   : > { %2255 = dma.hbm_to_vmem [thread:$0]  (!%p2698_p11), %s3192_s1, 384, %s216_s11, [#allocation9]  }
  0x34   : > { %s2407_s27 = scalar_lea.hbm %s3174_s2, 6144 }
  0x35   : > { %p2408_p9 = scmp.ne.s32.totalorder %s3174_s2, %s2407_s27  ;;  %p2414_p2 = scmp.lt.u32.totalorder %s2407_s27, %s3174_s2 }
  0x37   : > { %p2410_p12 = pnand %p2408_p9, %p2714_p13 }
  0x39   : > { %p2411_p1 = pneg %p2410_p12 }
  0x3b   : > { %p2416_p4 = pnand %p2414_p2, %p2411_p1 }
  0x3d   : > { %2419 = shalt.err (!%p2416_p4)
}
  0x3e   : > { %s2420_s11 = scalar_lea.vmem %s2702_s13, 6144  ;;  %p2428_p3 = scmp.lt.s32.totalorder %s2702_s13, %s2702_s13 }
  0x3f   : > { %p2421_p6 = scmp.ne.s32.totalorder %s2702_s13, %s2420_s11  ;;  %p2429_p5 = scmp.lt.s32.totalorder %s2420_s11, %s2420_s11 }
  0x41   : > { %p2423_p8 = pnand %p2421_p6, %p2714_p13  ;;  %p2430_p7 = por %p2429_p5, %p2428_p3 }
  0x43   : > { %p2424_p0 = pneg %p2423_p8 }
  0x45   : > { %p2431_p10 = pnand %p2430_p7, %p2424_p0 }
  0x47   : > { %2434 = shalt.err (!%p2431_p10)
}
  0x48   : > { %s2588_s17 = smov 384   ;;  %s2589_s8 = smov 24  }
  0x49   : > { %2258 = dma.hbm_to_vmem [thread:$0]  (!%p2698_p11), %s3174_s2, 6144, %s2702_s13, [#allocation9], %s2588_s17, %s2588_s17, %s2589_s8  }
  0x4a   : > { %s2435_s10 = scalar_lea.hbm %s3176_s4, 2048 }
  0x4b   : > { %p2436_p9 = scmp.ne.s32.totalorder %s3176_s4, %s2435_s10  ;;  %p2442_p2 = scmp.lt.u32.totalorder %s2435_s10, %s3176_s4 }
  0x4d   : > { %p2438_p12 = pnand %p2436_p9, %p2714_p13 }
  0x4f   : > { %p2439_p1 = pneg %p2438_p12 }
  0x51   : > { %p2444_p4 = pnand %p2442_p2, %p2439_p1 }
  0x53   : > { %2447 = shalt.err (!%p2444_p4)
}
  0x54   : > { %s2448_s18 = scalar_lea.vmem %s242_s16, 2048  ;;  %p2456_p3 = scmp.lt.s32.totalorder %s242_s16, %s242_s16 }
  0x55   : > { %p2449_p6 = scmp.ne.s32.totalorder %s242_s16, %s2448_s18  ;;  %p2457_p5 = scmp.lt.s32.totalorder %s2448_s18, %s2448_s18 }
  0x57   : > { %p2451_p8 = pnand %p2449_p6, %p2714_p13  ;;  %p2458_p7 = por %p2457_p5, %p2456_p3 }
  0x59   : > { %p2452_p0 = pneg %p2451_p8 }
  0x5b   : > { %p2459_p10 = pnand %p2458_p7, %p2452_p0 }
  0x5d   : > { %2462 = shalt.err (!%p2459_p10)
}
  0x5e   : > { %s2590_s13 = smov 128   ;;  %s2591_s1 = smov 8  }
  0x5f   : > { %2261 = dma.hbm_to_vmem [thread:$0]  (!%p2698_p11), %s3176_s4, 2048, %s242_s16, [#allocation12], %s2590_s13, %s2590_s13, %s2591_s1  }
  0x60   : > { %s45_s8 = sadd.s32 1, %s2571_s23  ;;  %s33_s19 = sadd.s32 1, %s2579_s25 }
  0x61   : > { %p52_p13 = scmp.ne.s32.totalorder %s2571_s23, %s2567_s22  ;;  %p34_p9 = scmp.ge.s32.totalorder %s33_s19, 2 }
  0x62   : > { %p53_p12 = scmp.eq.s32.totalorder %s2583_s26, 0  ;;  %p3194_p1 = scmp.ne.s32.totalorder %s3186_s30, 0 }
  0x63   : > { %p2273_p4 = scmp.lt.s32.totalorder %s2583_s26, 2  ;;  %s3209_s19 = smov (%p34_p9, %s33_s19), 0 }
  0x64   : > { %p2782_p2 = por %p3194_p1, %p52_p13  ;;  %p54_p6 = por %p53_p12, %p52_p13 }
  0x65   : > { %s258_s14 = sand.u32 1, %s2571_s23   ;;  %s40_s27 = ssub.s32 %s2579_s25, %s3209_s19 }
  0x66   : > { %p43_p8 = scmp.eq.s32.totalorder %s40_s27, 0  ;;  %s1659_s16 = sshll.u32 %s258_s14, 5 }
  0x67   : > { %s1691_s10 = sshll.u32 %s2579_s25, 9  ;;  %s262_s18 = scalar_lea.vmem [#allocation5], %s1659_s16 }
  0x68   : > { %s2794_s12 = scalar_select %p43_p8, %s2571_s23, %s45_s8  }
  0x69   : > { %s2799_s30 = scalar_lea.hbm %s3172_s0, %s1691_s10  ;;  %s270_s28 = sshll.u32 %s262_s18, 4  ;;  %s2801_s28 = int_to_ptr.vmem [resolvable:$true] %s270_s28 }
  0x6a   : > { %p2805_p11 = pnand %p2273_p4, %p54_p6  ;;  %s2809_s8 = scalar_lea.sflag [#allocation6], %s258_s14 }
  0x6b   : > { %s2463_s27 = scalar_lea.hbm %s2799_s30, 512  ;;  %s2468_s15 = scalar_lea.hbm %s3172_s0, 1024 }
  0x6c   : > { %p2464_p0 = scmp.ne.s32.totalorder %s2799_s30, %s2463_s27  ;;  %p2465_p3 = pneg %p2805_p11 }
  0x6d   : > { %p2469_p10 = scmp.lt.u32.totalorder %s2799_s30, %s3172_s0  ;;  %p2470_p13 = scmp.lt.u32.totalorder %s2468_s15, %s2463_s27 }
  0x6e   : > { %p2466_p5 = pnand %p2465_p3, %p2464_p0  ;;  %p2472_p12 = scmp.lt.u32.totalorder %s2463_s27, %s2799_s30 }
  0x6f   : > { %p2471_p9 = por %p2470_p13, %p2469_p10 }
  0x70   : > { %p2467_p7 = pneg %p2466_p5 }
  0x71   : > { %p2473_p1 = por %p2472_p12, %p2471_p9 }
  0x73   : > { %p2474_p4 = pnand %p2473_p1, %p2467_p7 }
  0x75   : > { %2477 = shalt.err (!%p2474_p4)
}
  0x76   : > { %s2478_s14 = scalar_lea.vmem %s2801_s28, 512  ;;  %s2592_s16 = smov [#allocation5]  }
  0x77   : > { %p2479_p6 = scmp.ne.s32.totalorder %s2801_s28, %s2478_s14  ;;  %s2483_s10 = sshll.u32 %s2592_s16, 4  ;;  %s2484_s10 = int_to_ptr.vmem [resolvable:$false] %s2483_s10 }
  0x78   : > { %s2485_s11 = scalar_lea.vmem %s2484_s10, 1024  ;;  %p2486_p5 = scmp.lt.s32.totalorder %s2801_s28, %s2484_s10 }
  0x79   : > { %p2481_p8 = pnand %p2479_p6, %p2465_p3  ;;  %p2487_p10 = scmp.lt.s32.totalorder %s2485_s11, %s2478_s14 }
  0x7b   : > { %p2482_p0 = pneg %p2481_p8  ;;  %p2488_p13 = por %p2487_p10, %p2486_p5 }
  0x7d   : > { %p2489_p9 = pnand %p2488_p13, %p2482_p0 }
  0x7f   : > { %2492 = shalt.err (!%p2489_p9)
}
  0x80   : > { %2265 = dma.hbm_to_vmem [thread:$0]  (!%p2805_p11), %s2799_s30, 512, %s2801_s28, %s2809_s8, %s2590_s13, %s2590_s13, %s2591_s1  }
  0x81   : > { %p3197_p3 = scmp.ne.s32.totalorder %s3190_s9, 0 }
  0x82   : > { %s2843_s27 = sand.u32 (!%p3197_p3), 1, %s2567_s22   ;;  %p3198_p7 = scmp.ne.s32.totalorder (!%p3197_p3), %s3187_s7, 0 }
  0x83   : > { %282 = sbr.rel (%p3197_p3) target bundleno = 1462 (0x5b6), region = 44  ;;  %s1663_s15 = sshll.u32 (!%p3197_p3), %s2843_s27, 5 }
  0x84   : > { %s285_s18 = scalar_lea.sflag (!%p3197_p3), [#allocation6], %s2843_s27  ;;  %s2847_s14 = scalar_lea.vmem (!%p3197_p3), [#allocation5], %s1663_s15 }
  0x8a   : > { %2546 = dma.done.wait (%p3198_p7), %s285_s18, 512  }
  0x8b   : > { %2548 = vsyncadd (%p3198_p7), %s285_s18, 4294966784  ;;  %p3199_p11 = scmp.ne.s32.totalorder %s3185_s29, 0 }
  0x8d   : > { %2550 = dma.done.wait (%p3199_p11), [#allocation9], 6528  }
  0x8e   : > { %2552 = vsyncadd (%p3199_p11), [#allocation9], 4294960768 }
  0x8f   : > { %2554 = dma.done.wait (%p3199_p11), [#allocation12], 2048  }
  0x90   : > { %2556 = vsyncadd (%p3199_p11), [#allocation12], 4294965248  ;;  %s2861_s9 = scalar_lea.vmem [#allocation13], %s1663_s15  ;;  %p1668_p12 = scmp.ne.s32.totalorder %s2575_s24, 0 }
  0x91   : > { %v2593_v0 = vmov (!%p1668_p12), 0.0  }
  0x92   : > { %334 = sbr.rel (%p1668_p12) target bundleno = 153 (0x99), region = 64  ;;  %335 = vst [vmem:[#allocation4] sm:$0xff] (!%p1668_p12), %v2593_v0 }
  0x99 PF: > { %v548_v1 = vld [vmem:[#allocation10 + $0x8] sm:$0xff]  ;;  %v551_v2 = vld [vmem:[#allocation10 + $0x20] sm:$0xff]  ;;  %v550_v5 = vld [vmem:[#allocation10 + $0x18] sm:$0xff]  ;;  %v2594_v8 = vmov 0.0   ;;  %vm343_vm0 = vcmask 64512   ;;  %v2595_v61 = vmov 0.0|0.0  }
  0x9a   : > { %v547_v3 = vld [vmem:[#allocation10] sm:$0xff]  ;;  %v2864_v4 = vpack.c.bf16 %v551_v2, %v548_v1  ;;  %v554_v6 = vld [vmem:[#allocation10 + $0x38] sm:$0xff]  ;;  %v557_v7 = vld [vmem:[#allocation10 + $0x50] sm:$0xff]  ;;  %420 = vmatprep.mubr.f32.mxu0 %v2594_v8  ;;  %659 = vmatprep.mubr.f32.mxu1 %v2594_v8  ;;  %vm2596_vm1 = vmmov 0   ;;  %s1692_s30 = sshll.u32 %s2575_s24, 9  ;;  %s1538_s28 = sshll.u32 %s2861_s9, 4  ;;  %s3121_s28 = int_to_ptr.vmem [resolvable:$true] %s1538_s28 }
  0x9b   : > { %v2868_v9 = vpack.c.bf16 %v550_v5, %v547_v3  ;;  %v2870_v10 = vpack.c.bf16 %v557_v7, %v554_v6  ;;  %v553_v11 = vld [vmem:[#allocation10 + $0x30] sm:$0xff]  ;;  %v556_v12 = vld [vmem:[#allocation10 + $0x48] sm:$0xff]  ;;  %v563_v14 = vld [vmem:[#allocation10 + $0x80] sm:$0xff]  ;;  %s3119_s16 = scalar_lea.hbm %s3178_s6, %s1692_s30  ;;  %s1524_s10 = scalar_lea.sflag [#allocation7], %s2843_s27 }
  0x9c   : > { %v560_v13 = vld [vmem:[#allocation10 + $0x68] sm:$0xff]  ;;  %1973 = vmatprep.subr.bf16.mxu1 %v2864_v4  ;;  %v2874_v15 = vpack.c.bf16 %v556_v12, %v553_v11  ;;  %v559_v17 = vld [vmem:[#allocation10 + $0x60] sm:$0xff]  ;;  %v562_v18 = vld [vmem:[#allocation10 + $0x78] sm:$0xff]  ;;  %s2493_s11 = scalar_lea.vmem %s3121_s28, 512  ;;  %s2597_s24 = smov [#allocation13]  }
  0x9d   : > { %1975 = vmatpush1.bf16.msra.mxu1 %v2868_v9  ;;  %v2877_v16 = vpack.c.bf16 %v563_v14, %v560_v13  ;;  %v566_v19 = vld [vmem:[#allocation10 + $0x98] sm:$0xff]  ;;  %v569_v20 = vld [vmem:[#allocation10 + $0xb0] sm:$0xff]  ;;  %v2880_v21 = vpack.c.bf16 %v562_v18, %v559_v17  ;;  %v568_v24 = vld [vmem:[#allocation10 + $0xa8] sm:$0xff]  ;;  %p2494_p1 = scmp.ne.s32.totalorder %s3121_s28, %s2493_s11  ;;  %s2497_s15 = sshll.u32 %s2597_s24, 4  ;;  %s2498_s15 = int_to_ptr.vmem [resolvable:$false] %s2497_s15 }
  0x9e   : > { %1977 = vmatprep.subr.bf16.mxu1 %v2870_v10  ;;  %v2883_v22 = vpack.c.bf16 %v569_v20, %v566_v19  ;;  %v565_v23 = vld [vmem:[#allocation10 + $0x90] sm:$0xff]  ;;  %v572_v25 = vld [vmem:[#allocation10 + $0xc8] sm:$0xff]  ;;  %v575_v26 = vld [vmem:[#allocation10 + $0xe0] sm:$0xff]  ;;  %s2499_s18 = scalar_lea.vmem %s2498_s15, 1024  ;;  %p2500_p8 = scmp.lt.s32.totalorder %s3121_s28, %s2498_s15 }
  0x9f   : > { %v341_v27 = vld [vmem:[#allocation8 + $0x8] sm:$0xff]  ;;  %v340_v28 = vld [vmem:[#allocation8] sm:$0xff]  ;;  %v2887_v30 = vpack.c.bf16 %v568_v24, %v565_v23  ;;  %v2890_v31 = vpack.c.bf16 %v575_v26, %v572_v25  ;;  %v571_v32 = vld [vmem:[#allocation10 + $0xc0] sm:$0xff]  ;;  %p2495_p4 = pnand %p2494_p1, %p2782_p2  ;;  %p2501_p0 = scmp.lt.s32.totalorder %s2499_s18, %s2493_s11 }
  0xa0   : > { %356 = vmatprep.subr.mxu0 %v341_v27  ;;  %v336_v29 = vld [vmem:[%s2847_s14] sm:$0xff]  ;;  %v574_v33 = vld [vmem:[#allocation10 + $0xd8] sm:$0xff]  ;;  %v581_v35 = vld [vmem:[#allocation10 + $0x110] sm:$0xff] }
  0xa1   : > { %1979 = vmatpush1.bf16.msra.mxu1 %v2874_v15  ;;  %357 = vmatpush1.msra.mxu0 %v340_v28  ;;  %v578_v34 = vld [vmem:[#allocation10 + $0xf8] sm:$0xff]  ;;  %v2895_v37 = vpack.c.bf16 %v574_v33, %v571_v32  ;;  %v337_v38 = vld [vmem:[%s2847_s14 + $0x8] sm:$0xff]  ;;  %v580_v41 = vld [vmem:[#allocation10 + $0x108] sm:$0xff]  ;;  %p2496_p6 = pneg %p2495_p4  ;;  %p2502_p5 = por %p2501_p0, %p2500_p8 }
  0xa2   : > { %1981 = vmatprep.subr.bf16.mxu1 %v2877_v16  ;;  %1669 = vmatmul.mubr.msk.f32.vlgmr.msra.gmra.mrb[0].mxu0 %vm343_vm0, %v336_v29  ;;  %v342_v36 = vld [vmem:[#allocation8 + $0x10] sm:$0xff]  ;;  %v2899_v39 = vpack.c.bf16 %v581_v35, %v578_v34  ;;  %v577_v40 = vld [vmem:[#allocation10 + $0xf0] sm:$0xff]  ;;  %v584_v42 = vld [vmem:[#allocation10 + $0x128] sm:$0xff] }
  0xa3   : > { %426 = vmatprep.mubr.f32.mxu0 %v2594_v8  ;;  %1786 = vmatprep.subr.mxu0 %v342_v36  ;;  %v587_v43 = vld [vmem:[#allocation10 + $0x140] sm:$0xff]  ;;  %v338_v44 = vld [vmem:[%s2847_s14 + $0x10] sm:$0xff]  ;;  %v2906_v45 = vpack.c.bf16 %v580_v41, %v577_v40  ;;  %v593_v50 = vld [vmem:[#allocation10 + $0x170] sm:$0xff]  ;;  %p2503_p10 = pnand %p2502_p5, %p2496_p6 }
  0xa4   : > { %1787 = vmatpush3.msra.mxu0 %v342_v36  ;;  %v2909_v46 = vpack.c.bf16 %v587_v43, %v584_v42  ;;  %v583_v47 = vld [vmem:[#allocation10 + $0x120] sm:$0xff]  ;;  %v586_v48 = vld [vmem:[#allocation10 + $0x138] sm:$0xff]  ;;  %v589_v54 = vld [vmem:[#allocation10 + $0x150] sm:$0xff] }
  0xa5   : > { %1983 = vmatpush1.bf16.msra.mxu1 %v2880_v21  ;;  %2029 = vmatprep.subr.bf16.mxu0 %v2864_v4  ;;  %v590_v49 = vld [vmem:[#allocation10 + $0x158] sm:$0xff]  ;;  %v339_v51 = vld [vmem:[%s2847_s14 + $0x18] sm:$0xff]  ;;  %v2915_v52 = vpack.c.bf16 %v586_v48, %v583_v47  ;;  %v592_v55 = vld [vmem:[#allocation10 + $0x168] sm:$0xff] }
  0xa6   : > { %1985 = vmatprep.subr.bf16.mxu1 %v2883_v22  ;;  %1670 = vmatmul.mubr.msk.f32.gmra.mrb[2].mxu0 %vm343_vm0, %v337_v38  ;;  %v2918_v53 = vpack.c.bf16 %v593_v50, %v590_v49  ;;  %v2923_v56 = vpack.c.bf16 %v592_v55, %v589_v54  ;;  %v549_v57 = vld [vmem:[#allocation10 + $0x10] sm:$0xff]  ;;  %v552_v58 = vld [vmem:[#allocation10 + $0x28] sm:$0xff]  ;;  %v2930_v59 = vld [vmem:[#allocation4] sm:$0xff] }
  0xa7   : > { %432 = vmatprep.mubr.f32.mxu0 %v2594_v8  ;;  %v2932_v60 = vpack.c.bf16 %v552_v58, %v549_v57  ;;  %v555_v62 = vld [vmem:[#allocation10 + $0x40] sm:$0xff]  ;;  %v558_v63 = vld [vmem:[#allocation10 + $0x58] sm:$0xff]  ;;  %v561_v1 = vld [vmem:[#allocation10 + $0x70] sm:$0xff] }
  0xa8   : > { %v2940_v0 = vpack.c.bf16 %v558_v63, %v555_v62  ;;  %v564_v2 = vld [vmem:[#allocation10 + $0x88] sm:$0xff]  ;;  %v567_v5 = vld [vmem:[#allocation10 + $0xa0] sm:$0xff]  ;;  %v570_v6 = vld [vmem:[#allocation10 + $0xb8] sm:$0xff] }
  0xa9   : > { %1987 = vmatpush1.bf16.msra.mxu1 %v2887_v30  ;;  %v2949_v3 = vpack.c.bf16 %v564_v2, %v561_v1  ;;  %v2955_v7 = vpack.c.bf16 %v570_v6, %v567_v5  ;;  %v573_v11 = vld [vmem:[#allocation10 + $0xd0] sm:$0xff]  ;;  %v576_v12 = vld [vmem:[#allocation10 + $0xe8] sm:$0xff]  ;;  %v579_v14 = vld [vmem:[#allocation10 + $0x100] sm:$0xff] }
  0xaa   : > { %1989 = vmatprep.subr.bf16.mxu1 %v2890_v31  ;;  %1671 = vmatmul.mubr.msk.f32.gmra.mrb[4].mxu0 %vm343_vm0, %v338_v44  ;;  %v2961_v13 = vpack.c.bf16 %v576_v12, %v573_v11  ;;  %v582_v17 = vld [vmem:[#allocation10 + $0x118] sm:$0xff]  ;;  %v585_v19 = vld [vmem:[#allocation10 + $0x130] sm:$0xff]  ;;  %v588_v20 = vld [vmem:[#allocation10 + $0x148] sm:$0xff] }
  0xab   : > { %438 = vmatprep.mubr.f32.mxu0 %v2594_v8  ;;  %v2967_v18 = vpack.c.bf16 %v582_v17, %v579_v14  ;;  %v2973_v23 = vpack.c.bf16 %v588_v20, %v585_v19  ;;  %v591_v24 = vld [vmem:[#allocation10 + $0x160] sm:$0xff]  ;;  %v594_v25 = vld [vmem:[#allocation10 + $0x178] sm:$0xff] }
  0xac   : > { %v2979_v26 = vpack.c.bf16 %v594_v25, %v591_v24  ;;  %v3013_v47 = vld [vmem:[%s3175_s3] sm:$0xff] }
  0xad   : > { %1991 = vmatpush1.bf16.msra.mxu1 %v2895_v37 }
  0xae   : > { %1993 = vmatprep.subr.bf16.mxu1 %v2899_v39  ;;  %1672 = vmatmul.mubr.msk.f32.gmra.mrb[6].mxu0 %vm343_vm0, %v339_v51 }
  0xaf   : > { %1788 = vmatprep.mubr.msk.f32.mxu0 %vm343_vm0, %v336_v29 }
  0xb1   : > { %1995 = vmatpush1.bf16.msra.mxu1 %v2906_v45 }
  0xb2   : > { %1997 = vmatprep.subr.bf16.mxu1 %v2909_v46  ;;  %1789 = vmatmul.mubr.msk.f32.vlgmr.msra.gmra.mrb[8].mxu0 %vm343_vm0, %v337_v38 }
  0xb3   : > { %2031 = vmatpush1.bf16.msra.mxu0 %v2868_v9  ;;  %1791 = vmatprep.mubr.msk.f32.mxu0 %vm343_vm0, %v338_v44 }
  0xb4   : > { %2033 = vmatprep.subr.bf16.mxu0 %v2870_v10 }
  0xb5   : > { %1999 = vmatpush1.bf16.msra.mxu1 %v2915_v52 }
  0xb6   : > { %2001 = vmatprep.subr.bf16.mxu1 %v2918_v53  ;;  %1792 = vmatmul.mubr.msk.f32.gmra.mrb[10].mxu0 %vm343_vm0, %v339_v51 }
  0xb7   : > { %2035 = vmatpush1.bf16.msra.mxu0 %v2874_v15  ;;  %874 = vmatprep.mubr.f32.mxu0 %v2594_v8 }
  0xb8   : > { %2037 = vmatprep.subr.bf16.mxu0 %v2877_v16 }
  0xb9   : > { %2003 = vmatpush1.bf16.msra.mxu1 %v2923_v56 }
  0xba   : > { %2004 = vmatprep.subr.bf16.mxu1 %v2595_v61 }
  0xbb   : > { %2039 = vmatpush1.bf16.msra.mxu0 %v2880_v21 }
  0xbc   : > { %660 = vmatmul.mubr.f32.vlgmr.msra.gmra.mrb[0].mxu1 %v2930_v59  ;;  %2041 = vmatprep.subr.bf16.mxu0 %v2883_v22 }
  0xbd   : > { %2006 = vmatpush3.bf16.msra.mxu1 %v2932_v60  ;;  %1826 = vmatprep.mubr.msk.f32.mxu1 %vm2596_vm1, %v2594_v8 }
  0xbe   : > { %2007 = vmatprep.subr.bf16.mxu1 %v2595_v61 }
  0xbf   : > { %2043 = vmatpush1.bf16.msra.mxu0 %v2887_v30 }
  0xc0   : > { %2045 = vmatprep.subr.bf16.mxu0 %v2890_v31 }
  0xc1   : > { %2009 = vmatpush3.bf16.msra.mxu1 %v2940_v0 }
  0xc2   : > { %2010 = vmatprep.subr.bf16.mxu1 %v2595_v61 }
  0xc3   : > { %2047 = vmatpush1.bf16.msra.mxu0 %v2895_v37 }
  0xc4   : > { %2049 = vmatprep.subr.bf16.mxu0 %v2899_v39 }
  0xc5   : > { %2012 = vmatpush3.bf16.msra.mxu1 %v2949_v3 }
  0xc6   : > { %2013 = vmatprep.subr.bf16.mxu1 %v2595_v61 }
  0xc7   : > { %2051 = vmatpush1.bf16.msra.mxu0 %v2906_v45 }
  0xc8   : > { %2053 = vmatprep.subr.bf16.mxu0 %v2909_v46 }
  0xc9   : > { %2015 = vmatpush3.bf16.msra.mxu1 %v2955_v7 }
  0xca   : > { %2016 = vmatprep.subr.bf16.mxu1 %v2595_v61 }
  0xcb   : > { %2055 = vmatpush1.bf16.msra.mxu0 %v2915_v52 }
  0xcc   : > { %2057 = vmatprep.subr.bf16.mxu0 %v2918_v53 }
  0xcd   : > { %2018 = vmatpush3.bf16.msra.mxu1 %v2961_v13 }
  0xce   : > { %2019 = vmatprep.subr.bf16.mxu1 %v2595_v61 }
  0xcf   : > { %2059 = vmatpush1.bf16.msra.mxu0 %v2923_v56 }
  0xd0   : > { %2085 = vmatprep.subr.bf16.mxu0 %v2864_v4 }
  0xd1   : > { %2021 = vmatpush3.bf16.msra.mxu1 %v2967_v18 }
  0xd2   : > { %2022 = vmatprep.subr.bf16.mxu1 %v2595_v61 }
  0xd5   : > { %2024 = vmatpush3.bf16.msra.mxu1 %v2973_v23 }
  0xd6   : > { %2025 = vmatprep.subr.bf16.mxu1 %v2595_v61 }
  0xd9   : > { %2027 = vmatpush3.bf16.msra.mxu1 %v2979_v26 }
  0xda   : > { %2060 = vmatprep.subr.bf16.mxu1 %v2595_v61 }
  0xdc   : > { %1827 = vmatmul.mubr.f32.vlgmr.msra.gmra.mrb[2].mxu1 %v2930_v59 }
  0xdd   : > { %2062 = vmatpush3.bf16.msra.mxu1 %v2932_v60  ;;  %1861 = vmatprep.mubr.msk.f32.mxu1 %vm2596_vm1, %v2594_v8 }
  0xde   : > { %2063 = vmatprep.subr.bf16.mxu1 %v2595_v61 }
  0xe1   : > { %2065 = vmatpush3.bf16.msra.mxu1 %v2940_v0 }
  0xe2   : > { %2066 = vmatprep.subr.bf16.mxu1 %v2595_v61 }
  0xe5   : > { %2068 = vmatpush3.bf16.msra.mxu1 %v2949_v3 }
  0xe6   : > { %2069 = vmatprep.subr.bf16.mxu1 %v2595_v61 }
  0xe9   : > { %2071 = vmatpush3.bf16.msra.mxu1 %v2955_v7 }
  0xea   : > { %2072 = vmatprep.subr.bf16.mxu1 %v2595_v61 }
  0xed   : > { %2074 = vmatpush3.bf16.msra.mxu1 %v2961_v13 }
  0xee   : > { %2075 = vmatprep.subr.bf16.mxu1 %v2595_v61 }
  0xf1   : > { %2077 = vmatpush3.bf16.msra.mxu1 %v2967_v18 }
  0xf2   : > { %2078 = vmatprep.subr.bf16.mxu1 %v2595_v61 }
  0xf5   : > { %2080 = vmatpush3.bf16.msra.mxu1 %v2973_v23 }
  0xf6   : > { %2081 = vmatprep.subr.bf16.mxu1 %v2595_v61 }
  0xf9   : > { %2083 = vmatpush3.bf16.msra.mxu1 %v2979_v26 }
  0xfa   : > { %2116 = vmatprep.subr.bf16.mxu1 %v2595_v61 }
 0x175   : > { %v422_v27 = vpop.f32.mrb[0].mxu0 }
 0x176   : > { %v424_v28 = vpop.f32.mrb[1].mxu0 }
 0x185   : > { %v3004_v29 = vpop.f32.mrb[8].mxu0 }
 0x186   : > { %v511_v32 = vpop.f32.mrb[9].mxu0 }
 0x189   : > { %v3006_v33 = vpop.f32.mrb[10].mxu0 }
 0x18a   : > { %v3008_v35 = vpop.f32.mrb[11].mxu0 }
 0x18f   : > { %v661_v34 = vpop.f32.mrb[0].mxu1 }
 0x190   : > { %v736_v36 = vadd.f32 %v661_v34, %v422_v27  ;;  %v663_v38 = vpop.f32.mrb[1].mxu1 }
 0x191   : > { %v743_v40 = vadd.f32 %v663_v38, %v424_v28 }
 0x192   : > { %v1677_v41 = vmul.f32 -1.442695, %v736_v36 }
 0x193   : > { %v1678_v43 = vmul.f32 -1.442695, %v743_v40 }
 0x194   : > { %2339 = vpow2.f32 %v1677_v41 }
 0x195   : > { %2341 = vpow2.f32 %v1678_v43  ;;  %v1417_v43 = vld [vmem:[#allocation11 + $0x30] sm:$0xff] }
 0x19e   : > { %v2340_v42 = vpop.eup %2339 }
 0x19f   : > { %v740_v44 = vadd.f32 1.0, %v2340_v42  ;;  %v2342_v49 = vpop.eup %2341  ;;  %v1416_v42 = vld [vmem:[#allocation11 + $0x28] sm:$0xff] }
 0x1a0   : > { %v747_v57 = vadd.f32 1.0, %v2342_v49  ;;  %v1419_v49 = vld [vmem:[#allocation11 + $0x40] sm:$0xff] }
 0x1a1   : > { %2343 = vrcp.f32 %v740_v44  ;;  %v1418_v44 = vld [vmem:[#allocation11 + $0x38] sm:$0xff] }
 0x1ab   : > { %v2344_v54 = vpop.eup %2343 }
 0x1af   : > { %v732_v48 = vpop.f32.mrb[2].mxu1 }
 0x1b0   : > { %v750_v50 = vadd.f32 %v732_v48, %v3013_v47  ;;  %v1828_v51 = vpop.f32.mrb[3].mxu1  ;;  %v2208_v48 = vpack.c.bf16 %v1418_v44, %v1417_v43 }
 0x1b2   : > { %v751_v55 = vmul.f32 %v2344_v54, %v750_v50  ;;  %v1420_v50 = vld [vmem:[#allocation11 + $0x48] sm:$0xff]  ;;  %v1421_v54 = vld [vmem:[#allocation11 + $0x50] sm:$0xff] }
 0x1b3   : > { %v2212_v51 = vpack.c.bf16 %v1420_v50, %v1419_v49 }
 0x1b4   : > { %v752_v58 = vadd.f32 %v751_v55, %v511_v32  ;;  %v1422_v55 = vld [vmem:[#allocation11 + $0x58] sm:$0xff] }
 0x1b6   : > { %2345 = vtanh.f32 %v752_v58  ;;  %v1423_v58 = vld [vmem:[#allocation11 + $0x60] sm:$0xff] }
 0x1b7   : > { %2347 = vrcp.f32 %v747_v57  ;;  %v2216_v57 = vpack.c.bf16 %v1422_v55, %v1421_v54 }
 0x1c0   : > { %v2346_v62 = vpop.eup %2345 }
 0x1c1   : > { %v754_v63 = vsub.f32 %v2930_v59, %v2346_v62  ;;  %v2348_v1 = vpop.eup %2347 }
 0x1c3   : > { %v755_v2 = vmul.f32 %v2348_v1, %v754_v63  ;;  %v1425_v1 = vld [vmem:[#allocation11 + $0x70] sm:$0xff] }
 0x1c5   : > { %v3017_v5 = vadd.f32 %v2346_v62, %v755_v2  ;;  %v1424_v62 = vld [vmem:[#allocation11 + $0x68] sm:$0xff]  ;;  %v1426_v2 = vld [vmem:[#allocation11 + $0x78] sm:$0xff] }
 0x1c6   : > { %v2220_v63 = vpack.c.bf16 %v1424_v62, %v1423_v58 }
 0x1c7   : > { %875 = vmatmul.mubr.f32.vlgmr.msra.gmra.mrb[2].mxu0 %v3017_v5  ;;  %1862 = vmatmul.mubr.f32.vlgmr.msra.gmra.mrb[4].mxu1 %v3017_v5 }
 0x1c8   : > { %2087 = vmatpush1.bf16.msra.mxu0 %v2868_v9  ;;  %2118 = vmatpush3.bf16.msra.mxu1 %v2932_v60 }
 0x1c9   : > { %2089 = vmatprep.subr.bf16.mxu0 %v2870_v10  ;;  %2119 = vmatprep.subr.bf16.mxu1 %v2595_v61 }
 0x1ca   : > { %1090 = vmatprep.mubr.f32.mxu0 %v2594_v8  ;;  %1896 = vmatprep.mubr.msk.f32.mxu1 %vm2596_vm1, %v2594_v8 }
 0x1cc   : > { %2091 = vmatpush1.bf16.msra.mxu0 %v2874_v15  ;;  %2121 = vmatpush3.bf16.msra.mxu1 %v2940_v0 }
 0x1cd   : > { %2093 = vmatprep.subr.bf16.mxu0 %v2877_v16  ;;  %2122 = vmatprep.subr.bf16.mxu1 %v2595_v61 }
 0x1d0   : > { %2095 = vmatpush1.bf16.msra.mxu0 %v2880_v21  ;;  %2124 = vmatpush3.bf16.msra.mxu1 %v2949_v3 }
 0x1d1   : > { %2097 = vmatprep.subr.bf16.mxu0 %v2883_v22  ;;  %2125 = vmatprep.subr.bf16.mxu1 %v2595_v61 }
 0x1d4   : > { %2099 = vmatpush1.bf16.msra.mxu0 %v2887_v30  ;;  %2127 = vmatpush3.bf16.msra.mxu1 %v2955_v7 }
 0x1d5   : > { %2101 = vmatprep.subr.bf16.mxu0 %v2890_v31  ;;  %2128 = vmatprep.subr.bf16.mxu1 %v2595_v61 }
 0x1d8   : > { %2103 = vmatpush1.bf16.msra.mxu0 %v2895_v37  ;;  %2130 = vmatpush3.bf16.msra.mxu1 %v2961_v13 }
 0x1d9   : > { %2105 = vmatprep.subr.bf16.mxu0 %v2899_v39  ;;  %2131 = vmatprep.subr.bf16.mxu1 %v2595_v61 }
 0x1dc   : > { %2107 = vmatpush1.bf16.msra.mxu0 %v2906_v45  ;;  %2133 = vmatpush3.bf16.msra.mxu1 %v2967_v18 }
 0x1dd   : > { %2109 = vmatprep.subr.bf16.mxu0 %v2909_v46  ;;  %2134 = vmatprep.subr.bf16.mxu1 %v2595_v61 }
 0x1e0   : > { %2111 = vmatpush1.bf16.msra.mxu0 %v2915_v52  ;;  %2136 = vmatpush3.bf16.msra.mxu1 %v2973_v23 }
 0x1e1   : > { %2113 = vmatprep.subr.bf16.mxu0 %v2918_v53  ;;  %2137 = vmatprep.subr.bf16.mxu1 %v2595_v61 }
 0x1e4   : > { %2115 = vmatpush1.bf16.msra.mxu0 %v2923_v56  ;;  %2139 = vmatpush3.bf16.msra.mxu1 %v2979_v26 }
 0x1e5   : > { %2141 = vmatprep.subr.bf16.mxu0 %v2864_v4  ;;  %2172 = vmatprep.subr.bf16.mxu1 %v2595_v61 }
 0x29a   : > { %v876_v59 = vpop.f32.mrb[2].mxu0  ;;  %v947_v6 = vpop.f32.mrb[4].mxu1 }
 0x29b   : > { %v1679_v11 = vmul.f32 -1.442695, %v876_v59  ;;  %v878_v12 = vpop.f32.mrb[3].mxu0  ;;  %v1863_v14 = vpop.f32.mrb[5].mxu1  ;;  %v965_v25 = vadd.f32 %v947_v6, %v3013_v47 }
 0x29c   : > { %v1680_v17 = vmul.f32 -1.442695, %v878_v12 }
 0x29d   : > { %2349 = vpow2.f32 %v1679_v11 }
 0x29e   : > { %2351 = vpow2.f32 %v1680_v17 }
 0x2a7   : > { %v2350_v19 = vpop.eup %2349 }
 0x2a8   : > { %v955_v20 = vadd.f32 1.0, %v2350_v19  ;;  %v2352_v24 = vpop.eup %2351 }
 0x2a9   : > { %v962_v32 = vadd.f32 1.0, %v2352_v24 }
 0x2aa   : > { %2353 = vrcp.f32 %v955_v20 }
 0x2b4   : > { %v2354_v27 = vpop.eup %2353 }
 0x2b5   : > { %v966_v28 = vmul.f32 %v2354_v27, %v965_v25 }
 0x2b7   : > { %v967_v4 = vadd.f32 %v3004_v29, %v966_v28  ;;  %v1415_v29 = vld [vmem:[#allocation11 + $0x20] sm:$0xff] }
 0x2b9   : > { %2355 = vtanh.f32 %v967_v4 }
 0x2ba   : > { %2357 = vrcp.f32 %v962_v32 }
 0x2c3   : > { %v2356_v34 = vpop.eup %2355 }
 0x2c4   : > { %v969_v36 = vsub.f32 %v3017_v5, %v2356_v34  ;;  %v2358_v38 = vpop.eup %2357 }
 0x2c6   : > { %v970_v40 = vmul.f32 %v2358_v38, %v969_v36 }
 0x2c8   : > { %v3059_v41 = vadd.f32 %v2356_v34, %v970_v40  ;;  %v1685_v34 = vld [vmem:[%s3177_s5] ss:$0 sm:$0xff] }
 0x2ca   : > { %1091 = vmatmul.mubr.f32.vlgmr.msra.gmra.mrb[4].mxu0 %v3059_v41  ;;  %1897 = vmatmul.mubr.f32.vlgmr.msra.gmra.mrb[6].mxu1 %v3059_v41 }
 0x2cb   : > { %2143 = vmatpush1.bf16.msra.mxu0 %v2868_v9  ;;  %2174 = vmatpush3.bf16.msra.mxu1 %v2932_v60  ;;  %v1412_v9 = vld [vmem:[#allocation11 + $0x8] sm:$0xff] }
 0x2cc   : > { %2145 = vmatprep.subr.bf16.mxu0 %v2870_v10  ;;  %2175 = vmatprep.subr.bf16.mxu1 %v2595_v61 }
 0x2cd   : > { %1306 = vmatprep.mubr.f32.mxu0 %v2594_v8  ;;  %1931 = vmatprep.mubr.msk.f32.mxu1 %vm2596_vm1, %v2594_v8  ;;  %v1411_v8 = vld [vmem:[#allocation11] sm:$0xff] }
 0x2ce   : > { %v2196_v10 = vpack.c.bf16 %v1412_v9, %v1411_v8 }
 0x2cf   : > { %2147 = vmatpush1.bf16.msra.mxu0 %v2874_v15  ;;  %2177 = vmatpush3.bf16.msra.mxu1 %v2940_v0 }
 0x2d0   : > { %2149 = vmatprep.subr.bf16.mxu0 %v2877_v16  ;;  %2178 = vmatprep.subr.bf16.mxu1 %v2595_v61 }
 0x2d3   : > { %2151 = vmatpush1.bf16.msra.mxu0 %v2880_v21  ;;  %2180 = vmatpush3.bf16.msra.mxu1 %v2949_v3 }
 0x2d4   : > { %2153 = vmatprep.subr.bf16.mxu0 %v2883_v22  ;;  %2181 = vmatprep.subr.bf16.mxu1 %v2595_v61 }
 0x2d7   : > { %2155 = vmatpush1.bf16.msra.mxu0 %v2887_v30  ;;  %2183 = vmatpush3.bf16.msra.mxu1 %v2955_v7  ;;  %v1413_v7 = vld [vmem:[#allocation11 + $0x10] sm:$0xff] }
 0x2d8   : > { %2157 = vmatprep.subr.bf16.mxu0 %v2890_v31  ;;  %2184 = vmatprep.subr.bf16.mxu1 %v2595_v61 }
 0x2db   : > { %2159 = vmatpush1.bf16.msra.mxu0 %v2895_v37  ;;  %2186 = vmatpush3.bf16.msra.mxu1 %v2961_v13  ;;  %v1414_v13 = vld [vmem:[#allocation11 + $0x18] sm:$0xff] }
 0x2dc   : > { %2161 = vmatprep.subr.bf16.mxu0 %v2899_v39  ;;  %2187 = vmatprep.subr.bf16.mxu1 %v2595_v61 }
 0x2df   : > { %2163 = vmatpush1.bf16.msra.mxu0 %v2906_v45  ;;  %2189 = vmatpush3.bf16.msra.mxu1 %v2967_v18 }
 0x2e0   : > { %2165 = vmatprep.subr.bf16.mxu0 %v2909_v46  ;;  %2190 = vmatprep.subr.bf16.mxu1 %v2595_v61 }
 0x2e3   : > { %2167 = vmatpush1.bf16.msra.mxu0 %v2915_v52  ;;  %2192 = vmatpush3.bf16.msra.mxu1 %v2973_v23 }
 0x2e4   : > { %2169 = vmatprep.subr.bf16.mxu0 %v2918_v53  ;;  %2193 = vmatprep.subr.bf16.mxu1 %v2595_v61 }
 0x2e7   : > { %2171 = vmatpush1.bf16.msra.mxu0 %v2923_v56  ;;  %2195 = vmatpush3.bf16.msra.mxu1 %v2979_v26  ;;  %v2200_v26 = vpack.c.bf16 %v1414_v13, %v1413_v7 }
 0x2e8   : > { %2197 = vmatprep.subr.bf16.mxu0 %v2196_v10 }
 0x39d   : > { %v1092_v15 = vpop.f32.mrb[4].mxu0  ;;  %v1163_v16 = vpop.f32.mrb[6].mxu1 }
 0x39e   : > { %v1681_v21 = vmul.f32 -1.442695, %v1092_v15  ;;  %v1094_v22 = vpop.f32.mrb[5].mxu0  ;;  %v1898_v30 = vpop.f32.mrb[7].mxu1  ;;  %v1181_v46 = vadd.f32 %v1163_v16, %v3013_v47 }
 0x39f   : > { %v1682_v31 = vmul.f32 -1.442695, %v1094_v22 }
 0x3a0   : > { %2359 = vpow2.f32 %v1681_v21 }
 0x3a1   : > { %2361 = vpow2.f32 %v1682_v31 }
 0x3aa   : > { %v2360_v37 = vpop.eup %2359 }
 0x3ab   : > { %v1171_v39 = vadd.f32 1.0, %v2360_v37  ;;  %v2362_v45 = vpop.eup %2361 }
 0x3ac   : > { %v1178_v60 = vadd.f32 1.0, %v2362_v45 }
 0x3ad   : > { %2363 = vrcp.f32 %v1171_v39 }
 0x3b7   : > { %v2364_v52 = vpop.eup %2363 }
 0x3b8   : > { %v1182_v53 = vmul.f32 %v2364_v52, %v1181_v46 }
 0x3ba   : > { %v1183_v56 = vadd.f32 %v1182_v53, %v3008_v35  ;;  %v2204_v35 = vpack.c.bf16 %v1416_v42, %v1415_v29 }
 0x3bc   : > { %2365 = vtanh.f32 %v1183_v56 }
 0x3bd   : > { %2367 = vrcp.f32 %v1178_v60 }
 0x3c6   : > { %v2366_v61 = vpop.eup %2365 }
 0x3c7   : > { %v1185_v0 = vsub.f32 %v3059_v41, %v2366_v61  ;;  %v2368_v3 = vpop.eup %2367 }
 0x3c9   : > { %v1186_v18 = vmul.f32 %v2368_v3, %v1185_v0 }
 0x3cb   : > { %v3099_v23 = vadd.f32 %v2366_v61, %v1186_v18 }
 0x3cd   : > { %1307 = vmatmul.mubr.f32.vlgmr.msra.gmra.mrb[6].mxu0 %v3099_v23  ;;  %1932 = vmatmul.mubr.f32.vlgmr.msra.gmra.mrb[8].mxu1 %v3099_v23 }
 0x3ce   : > { %2199 = vmatpush3.bf16.msra.mxu0 %v2196_v10  ;;  %1966 = vmatprep.mubr.f32.mxu0 %v3017_v5  ;;  %v2224_v5 = vpack.c.bf16 %v1426_v2, %v1425_v1 }
 0x3cf   : > { %2201 = vmatprep.subr.bf16.mxu0 %v2200_v26 }
 0x3d2   : > { %2203 = vmatpush3.bf16.msra.mxu0 %v2200_v26 }
 0x3d3   : > { %2205 = vmatprep.subr.bf16.mxu0 %v2204_v35 }
 0x3d6   : > { %2207 = vmatpush3.bf16.msra.mxu0 %v2204_v35 }
 0x3d7   : > { %2209 = vmatprep.subr.bf16.mxu0 %v2208_v48 }
 0x3da   : > { %2211 = vmatpush3.bf16.msra.mxu0 %v2208_v48 }
 0x3db   : > { %2213 = vmatprep.subr.bf16.mxu0 %v2212_v51 }
 0x3de   : > { %2215 = vmatpush3.bf16.msra.mxu0 %v2212_v51 }
 0x3df   : > { %2217 = vmatprep.subr.bf16.mxu0 %v2216_v57 }
 0x3e2   : > { %2219 = vmatpush3.bf16.msra.mxu0 %v2216_v57 }
 0x3e3   : > { %2221 = vmatprep.subr.bf16.mxu0 %v2220_v63 }
 0x3e6   : > { %2223 = vmatpush3.bf16.msra.mxu0 %v2220_v63 }
 0x3e7   : > { %2225 = vmatprep.subr.bf16.mxu0 %v2224_v5 }
 0x3ea   : > { %2227 = vmatpush3.bf16.msra.mxu0 %v2224_v5 }
 0x3ed   : > { %1967 = vmatmul.mubr.f32.vlgmr.msra.gmra.mrb[12].mxu0 %v3059_v41 }
 0x3ee   : > { %1969 = vmatprep.mubr.f32.mxu0 %v3099_v23 }
 0x4a0   : > { %v1308_v59 = vpop.f32.mrb[6].mxu0  ;;  %v1379_v6 = vpop.f32.mrb[8].mxu1 }
 0x4a1   : > { %v1683_v11 = vmul.f32 -1.442695, %v1308_v59  ;;  %v1310_v12 = vpop.f32.mrb[7].mxu0  ;;  %v1933_v14 = vpop.f32.mrb[9].mxu1  ;;  %v1397_v25 = vadd.f32 %v1379_v6, %v3013_v47 }
 0x4a2   : > { %v1684_v17 = vmul.f32 -1.442695, %v1310_v12 }
 0x4a3   : > { %2369 = vpow2.f32 %v1683_v11 }
 0x4a4   : > { %2371 = vpow2.f32 %v1684_v17 }
 0x4ad   : > { %v2370_v19 = vpop.eup %2369 }
 0x4ae   : > { %v1387_v20 = vadd.f32 1.0, %v2370_v19  ;;  %v2372_v24 = vpop.eup %2371 }
 0x4af   : > { %v1394_v32 = vadd.f32 1.0, %v2372_v24 }
 0x4b0   : > { %2373 = vrcp.f32 %v1387_v20 }
 0x4ba   : > { %v2374_v27 = vpop.eup %2373 }
 0x4bb   : > { %v1398_v28 = vmul.f32 %v2374_v27, %v1397_v25 }
 0x4bd   : > { %v1399_v4 = vadd.f32 %v3006_v33, %v1398_v28 }
 0x4bf   : > { %2375 = vtanh.f32 %v1399_v4 }
 0x4c0   : > { %v1968_v36 = vpop.f32.mrb[12].mxu0  ;;  %2377 = vrcp.f32 %v1394_v32 }
 0x4c1   : > { %v1506_v38 = vadd.f32 %v1968_v36, %v1685_v34  ;;  %v1500_v40 = vpop.f32.mrb[13].mxu0 }
 0x4c2   : > { %v1501_v41 = vadd.f32 %v1685_v34, %v1500_v40 }
 0x4c3   : > { %1520 = vst [vmem:[%s2861_s9 + $0x8] sm:$0xff] %v1506_v38 }
 0x4c4   : > { %1519 = vst [vmem:[%s2861_s9] sm:$0xff] %v1501_v41 }
 0x4c9   : > { %v2376_v47 = vpop.eup %2375 }
 0x4ca   : > { %v1401_v33 = vsub.f32 %v3099_v23, %v2376_v47  ;;  %v2378_v8 = vpop.eup %2377 }
 0x4cc   : > { %v1402_v9 = vmul.f32 %v2378_v8, %v1401_v33 }
 0x4ce   : > { %v1403_v10 = vadd.f32 %v2376_v47, %v1402_v9 }
 0x4d0   : > { %1406 = vst [vmem:[#allocation4] sm:$0xff] %v1403_v10  ;;  %1970 = vmatmul.mubr.f32.gmra.mrb[14].mxu0 %v1403_v10 }
 0x5a3   : > { %v1971_v15 = vpop.f32.mrb[14].mxu0 }
 0x5a4   : > { %v1516_v16 = vadd.f32 %v1971_v15, %v1685_v34  ;;  %v1510_v21 = vpop.f32.mrb[15].mxu0 }
 0x5a5   : > { %v1511_v22 = vadd.f32 %v1685_v34, %v1510_v21 }
 0x5a6   : > { %1522 = vst [vmem:[%s2861_s9 + $0x18] sm:$0xff] %v1516_v16 }
 0x5a7   : > { %1521 = vst [vmem:[%s2861_s9 + $0x10] sm:$0xff] %v1511_v22 }
 0x5a8   : > { %2506 = shalt.err (!%p2503_p10)
}
 0x5a9   : > { %s2507_s14 = scalar_lea.hbm %s3119_s16, 512  ;;  %s2511_s7 = scalar_lea.hbm %s3178_s6, 1024 }
 0x5aa   : > { %p2508_p13 = scmp.ne.s32.totalorder %s3119_s16, %s2507_s14  ;;  %p2512_p7 = scmp.lt.u32.totalorder %s3119_s16, %s3178_s6 }
 0x5ab   : > { %p2513_p11 = scmp.lt.u32.totalorder %s2511_s7, %s2507_s14  ;;  %p2515_p1 = scmp.lt.u32.totalorder %s2507_s14, %s3119_s16 }
 0x5ac   : > { %p2509_p9 = pnand %p2508_p13, %p2782_p2 }
 0x5ad   : > { %p2514_p12 = por %p2513_p11, %p2512_p7 }
 0x5ae   : > { %p2510_p3 = pneg %p2509_p9 }
 0x5af   : > { %p2516_p4 = por %p2515_p1, %p2514_p12 }
 0x5b1   : > { %p2517_p6 = pnand %p2516_p4, %p2510_p3 }
 0x5b3   : > { %2520 = shalt.err (!%p2517_p6)
}
 0x5b4   : > { %s2598_s30 = smov 128   ;;  %s2599_s17 = smov 8  }
 0x5b5   : > { %2250 = dma.vmem_to_hbm [thread:$0]  (%p2782_p2), %s3121_s28, 512, %s3119_s16, %s1524_s10, %s2598_s30, %s2598_s30, %s2599_s17  }
 0x5b6 PF: > { %s3200_s8 = sld [smem:[#allocation18_spill]]  ;;  %s1553_s11 = sand.u32 1, %s2563_s21  }
 0x5b7   : > { %p3202_p0 = scmp.ge.s32.totalorder %s2583_s26, 2  ;;  %s1554_s24 = scalar_lea.sflag [#allocation7], %s1553_s11 }
 0x5bc   : > { %p3201_p8 = scmp.ne.s32.totalorder %s3200_s8, 0 }
 0x5be   : > { %p2267_p5 = pnand %p3202_p0, %p3201_p8 }
 0x5c0   : > { %2558 = dma.done.wait (!%p2267_p5), %s1554_s24, 512  }
 0x5c1   : > { %2560 = vsyncadd (!%p2267_p5), %s1554_s24, 4294966784  ;;  %s24_s26 = sadd.s32 1, %s2583_s26   ;;  %s3203_s21 = smov %s2567_s22 }
 0x5c2   : > { %p21_p10 = scmp.ge.s32.totalorder %s24_s26, 4   ;;  %s3204_s22 = smov %s2571_s23 }
 0x5c3   : > { %s3205_s23 = smov %s2794_s12  ;;  %s3206_s24 = smov %s2579_s25 }
 0x5c4   : > { %s3207_s25 = smov %s3209_s19  ;;  %23 = sbr.rel (!%p21_p10) target bundleno = 10 (0xa), region = 111 }
 0x5cb   :  { %1559 = vsyncpa [#allocation6], 1 }
 0x5cc   :  { %1561 = vsyncpa [#allocation6 + $0x1], 1 }
 0x5cd   :  { %1562 = vsyncpa [#allocation9], 1 }
 0x5ce   :  { %1563 = vsyncpa [#allocation12], 1 }
 0x5cf   :  { %1564 = vsyncpa [#allocation7], 1 }
 0x5d0   :  { %1566 = vsyncpa [#allocation7 + $0x1], 1 }

</bundles_post_ra>
